<compile_context>
chip_gen: v7x
topology: tpu7x:2x2x1
jax: 0.10.0
libtpu: 0.0.40
codegen_flags: <defaults>
</compile_context>

<pallas_src>
import functools

import jax
import jax.numpy as jnp
from jax.experimental import pallas as pl
from jax.experimental.pallas import tpu as pltpu

_BN_EPS = 1e-5
_VMEM_LIMIT = 32 * 1024 * 1024      # explicit scoped-VMEM limit (v5e..v7x safe)
_TILE_BUDGET = 24 * 1024 * 1024     # double-buffered tile budget


def _pick_lane_tile(rq, cin, cout):
    """Largest lane tile in {2048..128} that divides rq and fits the budget."""
    divisors = [t for t in (2048, 1024, 512, 256, 128) if rq % t == 0]
    for t in divisors:
        # x tile (4, cin, t) f32 + out tile (cout, t) f32, double buffered.
        need = 2 * (4 * cin * t * 4) + 2 * (cout * t * 4)
        if need <= _TILE_BUDGET:
            return t
    if divisors:
        return divisors[-1]
    return rq                        # single whole-width tile (small shapes)


# ---------------------------------------------------------------------------
# Pass 1: per-channel batch statistics -> fused BN affine
#   a = gamma * rsqrt(var + eps),   b = beta - mean * a
# ---------------------------------------------------------------------------
def _stats_kernel(x_ref, gamma_ref, beta_ref, a_ref, b_ref, s_ref, ss_ref,
                  *, inv_count):
    @pl.when(pl.program_id(0) == 0)
    def _init():
        s_ref[...] = jnp.zeros_like(s_ref)
        ss_ref[...] = jnp.zeros_like(ss_ref)

    # x_ref tile: (4, Cin, TQ) f32 -- taps (leading), channels (sublanes),
    # flattened N*Ho*Wo (lanes).
    x0 = x_ref[0]
    s, sq = x0, x0 * x0
    for k in range(1, 4):
        xk = x_ref[k]
        s = s + xk
        sq = sq + xk * xk
    s_ref[...] += jnp.sum(s, axis=1, keepdims=True)    # (Cin, 1)
    ss_ref[...] += jnp.sum(sq, axis=1, keepdims=True)  # (Cin, 1)

    @pl.when(pl.program_id(0) == pl.num_programs(0) - 1)
    def _finalize():
        mean = s_ref[...] * inv_count
        var = ss_ref[...] * inv_count - mean * mean    # biased variance
        a = gamma_ref[...] * jax.lax.rsqrt(var + _BN_EPS)
        a_ref[...] = a
        b_ref[...] = beta_ref[...] - mean * a


# ---------------------------------------------------------------------------
# Pass 2: out = (0.25*W) @ sum_{4 taps} relu(x*a + b)   (BN->ReLU->pool->conv)
# ---------------------------------------------------------------------------
def _apply_kernel(a_ref, b_ref, w_ref, x_ref, o_ref):
    a = a_ref[...]                                     # (Cin, 1) f32
    b = b_ref[...]
    pooled = jnp.maximum(x_ref[0] * a + b, 0.0)
    for k in range(1, 4):
        pooled = pooled + jnp.maximum(x_ref[k] * a + b, 0.0)
    # 1x1 conv on the MXU; bf16 operands, f32 accumulation.  The 0.25 average-
    # pool scale is already folded into w_ref.
    o_ref[...] = jnp.dot(w_ref[...], pooled.astype(jnp.bfloat16),
                         preferred_element_type=jnp.float32).astype(o_ref.dtype)


# ---------------------------------------------------------------------------
# Wrapper (accepts / returns NCHW like the PyTorch module)
# ---------------------------------------------------------------------------
def trans_layer_forward(x_nchw, gamma, beta, conv_w):
    n, cin, h, w = x_nchw.shape
    assert h % 2 == 0 and w % 2 == 0, "AvgPool2d(2,2) path assumes even H, W"
    ho, wo = h // 2, w // 2
    rq = n * ho * wo                                   # flattened lane axis
    cout = conv_w.shape[0]
    tq = _pick_lane_tile(rq, cin, cout)
    grid = (rq // tq,)

    # Tap-major, lane-dense layout: (tap = 2*ph + pw, Cin, N*Ho*Wo).
    xp = x_nchw.reshape(n, cin, ho, 2, wo, 2)
    xp = jnp.transpose(xp, (3, 5, 1, 0, 2, 4)).reshape(4, cin, rq)
    xp = xp.astype(jnp.float32)

    g2 = gamma.reshape(cin, 1).astype(jnp.float32)
    bt2 = beta.reshape(cin, 1).astype(jnp.float32)
    # 1x1 conv weight with the pool's 0.25 folded in; bf16 for the MXU.
    w2 = (conv_w[:, :, 0, 0].astype(jnp.float32) * 0.25).astype(jnp.bfloat16)

    chan_spec = pl.BlockSpec((cin, 1), lambda t: (0, 0))
    x_spec = pl.BlockSpec((4, cin, tq), lambda t: (0, 0, t))

    # Pass 1: batch stats -> per-channel affine coefficients (a, b).
    a_aff, b_aff = pl.pallas_call(
        functools.partial(_stats_kernel, inv_count=1.0 / float(4 * rq)),
        grid=grid,
        in_specs=[x_spec, chan_spec, chan_spec],
        out_specs=(chan_spec, chan_spec),
        out_shape=(jax.ShapeDtypeStruct((cin, 1), jnp.float32),
                   jax.ShapeDtypeStruct((cin, 1), jnp.float32)),
        scratch_shapes=[pltpu.VMEM((cin, 1), jnp.float32),
                        pltpu.VMEM((cin, 1), jnp.float32)],
        compiler_params=pltpu.CompilerParams(
            dimension_semantics=("arbitrary",),
            vmem_limit_bytes=_VMEM_LIMIT),
    )(xp, g2, bt2)

    # Pass 2: BN affine + ReLU + 2x2 pool-sum + 1x1 conv.
    out = pl.pallas_call(
        _apply_kernel,
        grid=grid,
        in_specs=[chan_spec, chan_spec,
                  pl.BlockSpec((cout, cin), lambda t: (0, 0)),
                  x_spec],
        out_specs=pl.BlockSpec((cout, tq), lambda t: (0, t)),
        out_shape=jax.ShapeDtypeStruct((cout, rq), jnp.float32),
        compiler_params=pltpu.CompilerParams(
            dimension_semantics=("parallel",),
            vmem_limit_bytes=_VMEM_LIMIT),
    )(a_aff, b_aff, w2, xp)

    # (Cout, Rq=(n, ho, wo)) -> NCHW
    return jnp.transpose(out.reshape(cout, n, ho, wo), (1, 0, 2, 3))


# ---------------------------------------------------------------------------
# Pure-JAX reference of the module forward (for self-check)
# ---------------------------------------------------------------------------
def _reference(x, gamma, beta, conv_w):
    mean = jnp.mean(x, axis=(0, 2, 3), keepdims=True)
    var = jnp.mean((x - mean) ** 2, axis=(0, 2, 3), keepdims=True)
    xn = (x - mean) * jax.lax.rsqrt(var + _BN_EPS)
    xn = xn * gamma[None, :, None, None] + beta[None, :, None, None]
    xn = jnp.maximum(xn, 0.0)
    y = jnp.einsum("nchw,oc->nohw", xn, conv_w[:, :, 0, 0],
                   precision=jax.lax.Precision.HIGHEST)
    n, co, hh, ww = y.shape
    return y.reshape(n, co, hh // 2, 2, ww // 2, 2).mean(axis=(3, 5))


if __name__ == "__main__":
    key = jax.random.PRNGKey(0)
    kx, kw, kg, kb = jax.random.split(key, 4)

    # transLayer(inMap=16, outMap=8, dropout=0.0) on a (2, 16, 16, 16) input.
    N, CIN, H, W, COUT = 2, 16, 16, 16, 8
    x = jax.random.normal(kx, (N, CIN, H, W), dtype=jnp.float32)
    conv_w = 0.5 * jax.random.normal(kw, (COUT, CIN, 1, 1), dtype=jnp.float32)
    gamma = 1.0 + 0.1 * jax.random.normal(kg, (CIN,), dtype=jnp.float32)
    beta = 0.1 * jax.random.normal(kb, (CIN,), dtype=jnp.float32)

    out = jax.jit(trans_layer_forward)(x, gamma, beta, conv_w)
    out = jax.block_until_ready(out)

    ref = _reference(x, gamma, beta, conv_w)
    assert out.shape == (N, COUT, H // 2, W // 2), out.shape
    assert bool(jnp.all(jnp.isfinite(out)))
    # bf16 MXU operands -> slightly looser tolerance than pure f32.
    assert bool(jnp.allclose(out, ref, atol=2e-2, rtol=2e-2)), float(
        jnp.max(jnp.abs(out - ref)))
    print("KERNEL_OK")
</pallas_src>

<mosaic_0001>
module attributes {stable_mosaic.version = 11 : i64} {
  func.func @_stats_kernel(%arg0: i32, %arg1: memref<4x16x128xf32, #tpu.memory_space<vmem>>, %arg2: memref<16x1xf32, #tpu.memory_space<vmem>>, %arg3: memref<16x1xf32, #tpu.memory_space<vmem>>, %arg4: memref<16x1xf32, #tpu.memory_space<vmem>>, %arg5: memref<16x1xf32, #tpu.memory_space<vmem>>, %arg6: memref<16x1xf32, #tpu.memory_space<vmem>>, %arg7: memref<16x1xf32, #tpu.memory_space<vmem>>) attributes {dimension_semantics = [#tpu.dimension_semantics<arbitrary>], iteration_bounds = array<i64: 1>, scalar_prefetch = 0 : i64, scratch_operands = 2 : i64, tpu.core_type = #tpu.core_type<tc>, window_params = [{transform_indices = @transform_0, window_bounds = array<i64: 4, 16, 128>}, {pipeline_mode = #tpu.pipeline_mode<synchronous>, transform_indices = @transform_1, window_bounds = array<i64: 16, 1>}, {pipeline_mode = #tpu.pipeline_mode<synchronous>, transform_indices = @transform_2, window_bounds = array<i64: 16, 1>}, {pipeline_mode = #tpu.pipeline_mode<synchronous>, transform_indices = @transform_3, window_bounds = array<i64: 16, 1>}, {pipeline_mode = #tpu.pipeline_mode<synchronous>, transform_indices = @transform_4, window_bounds = array<i64: 16, 1>}]} {
    %c0_i32 = arith.constant 0 : i32
    %0 = arith.cmpi eq, %arg0, %c0_i32 : i32
    %1 = arith.extui %0 : i1 to i32
    %c0_i32_0 = arith.constant 0 : i32
    %2 = arith.cmpi ne, %1, %c0_i32_0 : i32
    scf.if %2 {
      %cst_20 = arith.constant 0.000000e+00 : f32
      %34 = vector.broadcast %cst_20 : f32 to vector<16x1xf32>
      %c0_21 = arith.constant 0 : index
      %c0_22 = arith.constant 0 : index
      %35 = vector.load %arg6[%c0_21, %c0_22] : memref<16x1xf32, #tpu.memory_space<vmem>>, vector<16x1xf32>
      tpu.vector_store %arg6[%c0_21, %c0_22], %34 {strides = array<i32>} : memref<16x1xf32, #tpu.memory_space<vmem>>, vector<16x1xf32>,
      %cst_23 = arith.constant 0.000000e+00 : f32
      %36 = vector.broadcast %cst_23 : f32 to vector<16x1xf32>
      %c0_24 = arith.constant 0 : index
      %c0_25 = arith.constant 0 : index
      %37 = vector.load %arg7[%c0_24, %c0_25] : memref<16x1xf32, #tpu.memory_space<vmem>>, vector<16x1xf32>
      tpu.vector_store %arg7[%c0_24, %c0_25], %36 {strides = array<i32>} : memref<16x1xf32, #tpu.memory_space<vmem>>, vector<16x1xf32>,
    } else {
    }
    %c0 = arith.constant 0 : index
    %c0_1 = arith.constant 0 : index
    %c0_2 = arith.constant 0 : index
    %3 = vector.load %arg1[%c0, %c0_1, %c0_2] : memref<4x16x128xf32, #tpu.memory_space<vmem>>, vector<1x16x128xf32>
    %4 = vector.shape_cast %3 : vector<1x16x128xf32> to vector<16x128xf32>
    %5 = arith.mulf %4, %4 : vector<16x128xf32>
    %c1 = arith.constant 1 : index
    %c0_3 = arith.constant 0 : index
    %c0_4 = arith.constant 0 : index
    %6 = vector.load %arg1[%c1, %c0_3, %c0_4] : memref<4x16x128xf32, #tpu.memory_space<vmem>>, vector<1x16x128xf32>
    %7 = vector.shape_cast %6 : vector<1x16x128xf32> to vector<16x128xf32>
    %8 = arith.addf %4, %7 : vector<16x128xf32>
    %9 = arith.mulf %7, %7 : vector<16x128xf32>
    %10 = arith.addf %5, %9 : vector<16x128xf32>
    %c2 = arith.constant 2 : index
    %c0_5 = arith.constant 0 : index
    %c0_6 = arith.constant 0 : index
    %11 = vector.load %arg1[%c2, %c0_5, %c0_6] : memref<4x16x128xf32, #tpu.memory_space<vmem>>, vector<1x16x128xf32>
    %12 = vector.shape_cast %11 : vector<1x16x128xf32> to vector<16x128xf32>
    %13 = arith.addf %8, %12 : vector<16x128xf32>
    %14 = arith.mulf %12, %12 : vector<16x128xf32>
    %15 = arith.addf %10, %14 : vector<16x128xf32>
    %c3 = arith.constant 3 : index
    %c0_7 = arith.constant 0 : index
    %c0_8 = arith.constant 0 : index
    %16 = vector.load %arg1[%c3, %c0_7, %c0_8] : memref<4x16x128xf32, #tpu.memory_space<vmem>>, vector<1x16x128xf32>
    %17 = vector.shape_cast %16 : vector<1x16x128xf32> to vector<16x128xf32>
    %18 = arith.addf %13, %17 : vector<16x128xf32>
    %19 = arith.mulf %17, %17 : vector<16x128xf32>
    %20 = arith.addf %15, %19 : vector<16x128xf32>
    %c0_9 = arith.constant 0 : index
    %c0_10 = arith.constant 0 : index
    %21 = vector.load %arg6[%c0_9, %c0_10] : memref<16x1xf32, #tpu.memory_space<vmem>>, vector<16x1xf32>
    %cst = arith.constant dense<0.000000e+00> : vector<16xf32>
    %22 = vector.multi_reduction <add>, %18, %cst [1] : vector<16x128xf32> to vector<16xf32>
    %23 = vector.shape_cast %22 : vector<16xf32> to vector<16x1xf32>
    %24 = arith.addf %21, %23 : vector<16x1xf32>
    %c0_11 = arith.constant 0 : index
    %c0_12 = arith.constant 0 : index
    %25 = vector.load %arg6[%c0_11, %c0_12] : memref<16x1xf32, #tpu.memory_space<vmem>>, vector<16x1xf32>
    tpu.vector_store %arg6[%c0_11, %c0_12], %24 {strides = array<i32>} : memref<16x1xf32, #tpu.memory_space<vmem>>, vector<16x1xf32>,
    %c0_13 = arith.constant 0 : index
    %c0_14 = arith.constant 0 : index
    %26 = vector.load %arg7[%c0_13, %c0_14] : memref<16x1xf32, #tpu.memory_space<vmem>>, vector<16x1xf32>
    %cst_15 = arith.constant dense<0.000000e+00> : vector<16xf32>
    %27 = vector.multi_reduction <add>, %20, %cst_15 [1] : vector<16x128xf32> to vector<16xf32>
    %28 = vector.shape_cast %27 : vector<16xf32> to vector<16x1xf32>
    %29 = arith.addf %26, %28 : vector<16x1xf32>
    %c0_16 = arith.constant 0 : index
    %c0_17 = arith.constant 0 : index
    %30 = vector.load %arg7[%c0_16, %c0_17] : memref<16x1xf32, #tpu.memory_space<vmem>>, vector<16x1xf32>
    tpu.vector_store %arg7[%c0_16, %c0_17], %29 {strides = array<i32>} : memref<16x1xf32, #tpu.memory_space<vmem>>, vector<16x1xf32>,
    %c0_i32_18 = arith.constant 0 : i32
    %31 = arith.cmpi eq, %arg0, %c0_i32_18 : i32
    %32 = arith.extui %31 : i1 to i32
    %c0_i32_19 = arith.constant 0 : i32
    %33 = arith.cmpi ne, %32, %c0_i32_19 : i32
    scf.if %33 {
      %c0_20 = arith.constant 0 : index
      %c0_21 = arith.constant 0 : index
      %34 = vector.load %arg6[%c0_20, %c0_21] : memref<16x1xf32, #tpu.memory_space<vmem>>, vector<16x1xf32>
      %cst_22 = arith.constant 0.001953125 : f32
      %35 = vector.broadcast %cst_22 : f32 to vector<16x1xf32>
      %36 = arith.mulf %34, %35 : vector<16x1xf32>
      %c0_23 = arith.constant 0 : index
      %c0_24 = arith.constant 0 : index
      %37 = vector.load %arg7[%c0_23, %c0_24] : memref<16x1xf32, #tpu.memory_space<vmem>>, vector<16x1xf32>
      %cst_25 = arith.constant 0.001953125 : f32
      %38 = vector.broadcast %cst_25 : f32 to vector<16x1xf32>
      %39 = arith.mulf %37, %38 : vector<16x1xf32>
      %40 = arith.mulf %36, %36 : vector<16x1xf32>
      %41 = arith.subf %39, %40 : vector<16x1xf32>
      %c0_26 = arith.constant 0 : index
      %c0_27 = arith.constant 0 : index
      %42 = vector.load %arg2[%c0_26, %c0_27] : memref<16x1xf32, #tpu.memory_space<vmem>>, vector<16x1xf32>
      %cst_28 = arith.constant 9.99999974E-6 : f32
      %43 = vector.broadcast %cst_28 : f32 to vector<16x1xf32>
      %44 = arith.addf %41, %43 : vector<16x1xf32>
      %45 = math.rsqrt %44 : vector<16x1xf32>
      %46 = arith.mulf %42, %45 : vector<16x1xf32>
      %c0_29 = arith.constant 0 : index
      %c0_30 = arith.constant 0 : index
      %47 = vector.load %arg4[%c0_29, %c0_30] : memref<16x1xf32, #tpu.memory_space<vmem>>, vector<16x1xf32>
      tpu.vector_store %arg4[%c0_29, %c0_30], %46 {strides = array<i32>} : memref<16x1xf32, #tpu.memory_space<vmem>>, vector<16x1xf32>,
      %c0_31 = arith.constant 0 : index
      %c0_32 = arith.constant 0 : index
      %48 = vector.load %arg3[%c0_31, %c0_32] : memref<16x1xf32, #tpu.memory_space<vmem>>, vector<16x1xf32>
      %49 = arith.mulf %36, %46 : vector<16x1xf32>
      %50 = arith.subf %48, %49 : vector<16x1xf32>
      %c0_33 = arith.constant 0 : index
      %c0_34 = arith.constant 0 : index
      %51 = vector.load %arg5[%c0_33, %c0_34] : memref<16x1xf32, #tpu.memory_space<vmem>>, vector<16x1xf32>
      tpu.vector_store %arg5[%c0_33, %c0_34], %50 {strides = array<i32>} : memref<16x1xf32, #tpu.memory_space<vmem>>, vector<16x1xf32>,
    } else {
    }
    return
  }
  func.func @transform_0(%arg0: i32) -> (i32, i32, i32) {
    %c0_i32 = arith.constant 0 : i32
    %c0_i32_0 = arith.constant 0 : i32
    %c0_i32_1 = arith.constant 0 : i32
    return %c0_i32, %c0_i32_0, %arg0 : i32, i32, i32
  }
  func.func @transform_1(%arg0: i32) -> (i32, i32) {
    %c0_i32 = arith.constant 0 : i32
    %c0_i32_0 = arith.constant 0 : i32
    %c0_i32_1 = arith.constant 0 : i32
    return %c0_i32, %c0_i32_0 : i32, i32
  }
  func.func @transform_2(%arg0: i32) -> (i32, i32) {
    %c0_i32 = arith.constant 0 : i32
    %c0_i32_0 = arith.constant 0 : i32
    %c0_i32_1 = arith.constant 0 : i32
    return %c0_i32, %c0_i32_0 : i32, i32
  }
  func.func @transform_3(%arg0: i32) -> (i32, i32) {
    %c0_i32 = arith.constant 0 : i32
    %c0_i32_0 = arith.constant 0 : i32
    %c0_i32_1 = arith.constant 0 : i32
    return %c0_i32, %c0_i32_0 : i32, i32
  }
  func.func @transform_4(%arg0: i32) -> (i32, i32) {
    %c0_i32 = arith.constant 0 : i32
    %c0_i32_0 = arith.constant 0 : i32
    %c0_i32_1 = arith.constant 0 : i32
    return %c0_i32, %c0_i32_0 : i32, i32
  }
}

module attributes {stable_mosaic.version = 11 : i64} {
  func.func @_apply_kernel(%arg0: i32, %arg1: memref<16x1xf32, #tpu.memory_space<vmem>>, %arg2: memref<16x1xf32, #tpu.memory_space<vmem>>, %arg3: memref<8x16xbf16, #tpu.memory_space<vmem>>, %arg4: memref<4x16x128xf32, #tpu.memory_space<vmem>>, %arg5: memref<8x128xf32, #tpu.memory_space<vmem>>) attributes {dimension_semantics = [#tpu.dimension_semantics<parallel>], iteration_bounds = array<i64: 1>, scalar_prefetch = 0 : i64, scratch_operands = 0 : i64, tpu.core_type = #tpu.core_type<tc>, window_params = [{pipeline_mode = #tpu.pipeline_mode<synchronous>, transform_indices = @transform_0, window_bounds = array<i64: 16, 1>}, {pipeline_mode = #tpu.pipeline_mode<synchronous>, transform_indices = @transform_1, window_bounds = array<i64: 16, 1>}, {pipeline_mode = #tpu.pipeline_mode<synchronous>, transform_indices = @transform_2, window_bounds = array<i64: 8, 16>}, {transform_indices = @transform_3, window_bounds = array<i64: 4, 16, 128>}, {transform_indices = @transform_4, window_bounds = array<i64: 8, 128>}]} {
    %c0 = arith.constant 0 : index
    %c0_0 = arith.constant 0 : index
    %0 = vector.load %arg1[%c0, %c0_0] : memref<16x1xf32, #tpu.memory_space<vmem>>, vector<16x1xf32>
    %c0_1 = arith.constant 0 : index
    %c0_2 = arith.constant 0 : index
    %1 = vector.load %arg2[%c0_1, %c0_2] : memref<16x1xf32, #tpu.memory_space<vmem>>, vector<16x1xf32>
    %c0_3 = arith.constant 0 : index
    %c0_4 = arith.constant 0 : index
    %c0_5 = arith.constant 0 : index
    %2 = vector.load %arg4[%c0_3, %c0_4, %c0_5] : memref<4x16x128xf32, #tpu.memory_space<vmem>>, vector<1x16x128xf32>
    %3 = vector.shape_cast %2 : vector<1x16x128xf32> to vector<16x128xf32>
    %4 = vector.broadcast %0 : vector<16x1xf32> to vector<16x128xf32>
    %5 = arith.mulf %3, %4 : vector<16x128xf32>
    %6 = vector.broadcast %1 : vector<16x1xf32> to vector<16x128xf32>
    %7 = arith.addf %5, %6 : vector<16x128xf32>
    %cst = arith.constant 0.000000e+00 : f32
    %8 = vector.broadcast %cst : f32 to vector<16x128xf32>
    %9 = arith.maximumf %7, %8 : vector<16x128xf32>
    %c1 = arith.constant 1 : index
    %c0_6 = arith.constant 0 : index
    %c0_7 = arith.constant 0 : index
    %10 = vector.load %arg4[%c1, %c0_6, %c0_7] : memref<4x16x128xf32, #tpu.memory_space<vmem>>, vector<1x16x128xf32>
    %11 = vector.shape_cast %10 : vector<1x16x128xf32> to vector<16x128xf32>
    %12 = vector.broadcast %0 : vector<16x1xf32> to vector<16x128xf32>
    %13 = arith.mulf %11, %12 : vector<16x128xf32>
    %14 = vector.broadcast %1 : vector<16x1xf32> to vector<16x128xf32>
    %15 = arith.addf %13, %14 : vector<16x128xf32>
    %cst_8 = arith.constant 0.000000e+00 : f32
    %16 = vector.broadcast %cst_8 : f32 to vector<16x128xf32>
    %17 = arith.maximumf %15, %16 : vector<16x128xf32>
    %18 = arith.addf %9, %17 : vector<16x128xf32>
    %c2 = arith.constant 2 : index
    %c0_9 = arith.constant 0 : index
    %c0_10 = arith.constant 0 : index
    %19 = vector.load %arg4[%c2, %c0_9, %c0_10] : memref<4x16x128xf32, #tpu.memory_space<vmem>>, vector<1x16x128xf32>
    %20 = vector.shape_cast %19 : vector<1x16x128xf32> to vector<16x128xf32>
    %21 = vector.broadcast %0 : vector<16x1xf32> to vector<16x128xf32>
    %22 = arith.mulf %20, %21 : vector<16x128xf32>
    %23 = vector.broadcast %1 : vector<16x1xf32> to vector<16x128xf32>
    %24 = arith.addf %22, %23 : vector<16x128xf32>
    %cst_11 = arith.constant 0.000000e+00 : f32
    %25 = vector.broadcast %cst_11 : f32 to vector<16x128xf32>
    %26 = arith.maximumf %24, %25 : vector<16x128xf32>
    %27 = arith.addf %18, %26 : vector<16x128xf32>
    %c3 = arith.constant 3 : index
    %c0_12 = arith.constant 0 : index
    %c0_13 = arith.constant 0 : index
    %28 = vector.load %arg4[%c3, %c0_12, %c0_13] : memref<4x16x128xf32, #tpu.memory_space<vmem>>, vector<1x16x128xf32>
    %29 = vector.shape_cast %28 : vector<1x16x128xf32> to vector<16x128xf32>
    %30 = vector.broadcast %0 : vector<16x1xf32> to vector<16x128xf32>
    %31 = arith.mulf %29, %30 : vector<16x128xf32>
    %32 = vector.broadcast %1 : vector<16x1xf32> to vector<16x128xf32>
    %33 = arith.addf %31, %32 : vector<16x128xf32>
    %cst_14 = arith.constant 0.000000e+00 : f32
    %34 = vector.broadcast %cst_14 : f32 to vector<16x128xf32>
    %35 = arith.maximumf %33, %34 : vector<16x128xf32>
    %36 = arith.addf %27, %35 : vector<16x128xf32>
    %c0_15 = arith.constant 0 : index
    %c0_16 = arith.constant 0 : index
    %37 = vector.load %arg3[%c0_15, %c0_16] : memref<8x16xbf16, #tpu.memory_space<vmem>>, vector<8x16xbf16>
    %38 = arith.truncf %36 : vector<16x128xf32> to vector<16x128xbf16>
    %cst_17 = arith.constant dense<0.000000e+00> : vector<8x128xf32>
    %39 = tpu.matmul %37, %38, %cst_17 {dimension_numbers = #tpu.dot_dimension_numbers<[1], [0], [0], [1], [0, 0, 1, 1], [], []>} : vector<8x16xbf16>, vector<16x128xbf16>, vector<8x128xf32> -> vector<8x128xf32>
    %c0_18 = arith.constant 0 : index
    %c0_19 = arith.constant 0 : index
    %40 = vector.load %arg5[%c0_18, %c0_19] : memref<8x128xf32, #tpu.memory_space<vmem>>, vector<8x128xf32>
    tpu.vector_store %arg5[%c0_18, %c0_19], %39 {strides = array<i32>} : memref<8x128xf32, #tpu.memory_space<vmem>>, vector<8x128xf32>,
    return
  }
  func.func @transform_0(%arg0: i32) -> (i32, i32) {
    %c0_i32 = arith.constant 0 : i32
    %c0_i32_0 = arith.constant 0 : i32
    %c0_i32_1 = arith.constant 0 : i32
    return %c0_i32, %c0_i32_0 : i32, i32
  }
  func.func @transform_1(%arg0: i32) -> (i32, i32) {
    %c0_i32 = arith.constant 0 : i32
    %c0_i32_0 = arith.constant 0 : i32
    %c0_i32_1 = arith.constant 0 : i32
    return %c0_i32, %c0_i32_0 : i32, i32
  }
  func.func @transform_2(%arg0: i32) -> (i32, i32) {
    %c0_i32 = arith.constant 0 : i32
    %c0_i32_0 = arith.constant 0 : i32
    %c0_i32_1 = arith.constant 0 : i32
    return %c0_i32, %c0_i32_0 : i32, i32
  }
  func.func @transform_3(%arg0: i32) -> (i32, i32, i32) {
    %c0_i32 = arith.constant 0 : i32
    %c0_i32_0 = arith.constant 0 : i32
    %c0_i32_1 = arith.constant 0 : i32
    return %c0_i32, %c0_i32_0, %arg0 : i32, i32, i32
  }
  func.func @transform_4(%arg0: i32) -> (i32, i32) {
    %c0_i32 = arith.constant 0 : i32
    %c0_i32_0 = arith.constant 0 : i32
    return %c0_i32, %arg0 : i32, i32
  }
}

</mosaic_0001>

<bundles_post_ra>
// kernel: trans_layer_forward.2
= control target key start
LH: loop header
LB: loop body
LE: loop exit
PB: predicated region body
PF: predicated region fallthrough
CT: control target
= control target key end

     0   :  { %vm20_vm0 = vcmask 7168   ;;  %v129_v3 = vmov 0.0   ;;  %s215_s0 = inlined_call_operand.vmem [shape: f32[4,16,128], index: 0, kind: input, shape index: {}]   ;;  %s216_s1 = inlined_call_operand.vmem [shape: f32[16,1], index: 1, kind: input, shape index: {}]   ;;  %s217_s2 = inlined_call_operand.vmem [shape: f32[16,1], index: 2, kind: input, shape index: {}]   ;;  %s218_s3 = inlined_call_operand.vmem [shape: f32[16,1], index: 3, kind: output, shape index: {0}]   ;;  %s219_s4 = inlined_call_operand.vmem [shape: f32[16,1], index: 4, kind: output, shape index: {1}]  }
   0x1   :  { %v25_v0 = vld [vmem:[%s215_s0] sm:$0xff]  ;;  %v118_v1 = vld [vmem:[%s215_s0 + $0x10] sm:$0xff]  ;;  %21 = vst.msk [vmem:[#allocation2] sm:$0xff] %vm20_vm0, %v129_v3  ;;  %22 = vst.msk [vmem:[#allocation2 + $0x8] sm:$0xff] %vm20_vm0, %v129_v3 }
   0x2   :  { %v120_v2 = vld [vmem:[%s215_s0 + $0x20] sm:$0xff]  ;;  %23 = vst.msk [vmem:[#allocation3] sm:$0xff] %vm20_vm0, %v129_v3  ;;  %24 = vst.msk [vmem:[#allocation3 + $0x8] sm:$0xff] %vm20_vm0, %v129_v3  ;;  %v32_v4 = vadd.f32 %v118_v1, %v25_v0  ;;  %v122_v5 = vld [vmem:[%s215_s0 + $0x30] sm:$0xff]  ;;  %v27_v6 = vmul.f32 %v25_v0, %v25_v0  ;;  %v34_v7 = vmul.f32 %v118_v1, %v118_v1 }
   0x3   :  { %v43_v8 = vmul.f32 %v120_v2, %v120_v2  ;;  %v26_v9 = vld [vmem:[%s215_s0 + $0x8] sm:$0xff]  ;;  %v119_v10 = vld [vmem:[%s215_s0 + $0x18] sm:$0xff]  ;;  %v52_v18 = vmul.f32 %v122_v5, %v122_v5  ;;  %v92_v55 = vld [vmem:[%s216_s1] sm:$0xff] }
   0x4   :  { %v33_v11 = vadd.f32 %v119_v10, %v26_v9  ;;  %v121_v12 = vld [vmem:[%s215_s0 + $0x28] sm:$0xff]  ;;  %v123_v13 = vld [vmem:[%s215_s0 + $0x38] sm:$0xff]  ;;  %v28_v14 = vmul.f32 %v26_v9, %v26_v9  ;;  %v35_v15 = vmul.f32 %v119_v10, %v119_v10  ;;  %v41_v16 = vadd.f32 %v120_v2, %v32_v4  ;;  %v102_v58 = vld [vmem:[%s217_s2] sm:$0xff] }
   0x5   :  { %v36_v17 = vadd.f32 %v34_v7, %v27_v6  ;;  %v44_v19 = vmul.f32 %v121_v12, %v121_v12  ;;  %v53_v24 = vmul.f32 %v123_v13, %v123_v13  ;;  %v93_v59 = vld [vmem:[%s216_s1 + $0x8] sm:$0xff] }
   0x6   :  { %v42_v20 = vadd.f32 %v121_v12, %v33_v11  ;;  %v37_v21 = vadd.f32 %v35_v15, %v28_v14  ;;  %v50_v22 = vadd.f32 %v122_v5, %v41_v16  ;;  %v103_v0 = vld [vmem:[%s217_s2 + $0x8] sm:$0xff] }
   0x7   :  { %v45_v23 = vadd.f32 %v43_v8, %v36_v17 }
   0x8   :  { %v46_v25 = vadd.f32 %v44_v19, %v37_v21  ;;  %58 = vadd.xlane.f32.xlu0 %v50_v22  ;;  %v51_v27 = vadd.f32 %v123_v13, %v42_v20  ;;  %v56_v29 = vld [vmem:[#allocation2] sm:$0xff]  ;;  %v57_v34 = vld [vmem:[#allocation2 + $0x8] sm:$0xff] }
   0x9   :  { %v54_v26 = vadd.f32 %v52_v18, %v45_v23  ;;  %v67_v31 = vld [vmem:[#allocation3] sm:$0xff]  ;;  %v68_v37 = vld [vmem:[#allocation3 + $0x8] sm:$0xff] }
   0xa   :  { %v55_v28 = vadd.f32 %v53_v24, %v46_v25 }
   0xb   :  { %69 = vadd.xlane.f32.xlu1 %v54_v26 }
   0xc   :  { %60 = vadd.xlane.f32.xlu0 %v51_v27 }
   0xf   :  { %71 = vadd.xlane.f32.xlu1 %v55_v28 }
  0x95   :  { %v59_v30 = vpop.xlane.xlu0 %58 }
  0x96   :  { %v62_v32 = vadd.f32 %v59_v30, %v56_v29 }
  0x98   :  { %v70_v33 = vpop.xlane.xlu1 %69  ;;  %65 = vst.msk [vmem:[#allocation2] sm:$0xff] %vm20_vm0, %v62_v32 }
  0x99   :  { %v73_v35 = vadd.f32 %v70_v33, %v67_v31  ;;  %v61_v36 = vpop.xlane.xlu0 %60 }
  0x9a   :  { %v63_v38 = vadd.f32 %v61_v36, %v57_v34 }
  0x9b   :  { %75 = vst.msk [vmem:[#allocation3] sm:$0xff] %vm20_vm0, %v73_v35 }
  0x9c   :  { %v72_v39 = vpop.xlane.xlu1 %71  ;;  %66 = vst.msk [vmem:[#allocation2 + $0x8] sm:$0xff] %vm20_vm0, %v63_v38 }
  0x9d   :  { %v74_v40 = vadd.f32 %v72_v39, %v68_v37 }
  0x9f   :  { %76 = vst.msk [vmem:[#allocation3 + $0x8] sm:$0xff] %vm20_vm0, %v74_v40  ;;  %v80_v41 = vld [vmem:[#allocation2] sm:$0xff] }
  0xa0   :  { %v82_v42 = vmul.f32 0.001953125, %v80_v41 }
  0xa2   :  { %v84_v43 = vld [vmem:[#allocation3] sm:$0xff]  ;;  %v88_v44 = vmul.f32 %v82_v42, %v82_v42 }
  0xa3   :  { %v86_v45 = vmul.f32 0.001953125, %v84_v43  ;;  %v81_v46 = vld [vmem:[#allocation2 + $0x8] sm:$0xff] }
  0xa4   :  { %v83_v48 = vmul.f32 0.001953125, %v81_v46 }
  0xa5   :  { %v90_v47 = vsub.f32 %v86_v45, %v88_v44 }
  0xa6   :  { %v85_v49 = vld [vmem:[#allocation3 + $0x8] sm:$0xff]  ;;  %v89_v51 = vmul.f32 %v83_v48, %v83_v48 }
  0xa7   :  { %v94_v50 = vadd.f32 1e-05, %v90_v47  ;;  %v87_v52 = vmul.f32 0.001953125, %v85_v49 }
  0xa9   :  { %125 = vrsqrt.f32 %v94_v50  ;;  %v91_v53 = vsub.f32 %v87_v52, %v89_v51 }
  0xab   :  { %v95_v54 = vadd.f32 1e-05, %v91_v53 }
  0xad   :  { %127 = vrsqrt.f32 %v95_v54 }
  0xb3   :  { %v126_v56 = vpop.eup %125 }
  0xb4   :  { %v98_v57 = vmul.f32 %v126_v56, %v92_v55 }
  0xb6   :  { %100 = vst.msk [vmem:[%s218_s3] sm:$0xff] %vm20_vm0, %v98_v57  ;;  %v104_v60 = vmul.f32 %v98_v57, %v82_v42 }
  0xb7   :  { %v128_v61 = vpop.eup %127 }
  0xb8   :  { %v106_v62 = vsub.f32 %v102_v58, %v104_v60  ;;  %v99_v63 = vmul.f32 %v128_v61, %v93_v59 }
  0xba   :  { %108 = vst.msk [vmem:[%s219_s4] sm:$0xff] %vm20_vm0, %v106_v62  ;;  %101 = vst.msk [vmem:[%s218_s3 + $0x8] sm:$0xff] %vm20_vm0, %v99_v63  ;;  %v105_v1 = vmul.f32 %v99_v63, %v83_v48 }
  0xbc   :  { %v107_v2 = vsub.f32 %v103_v0, %v105_v1 }
  0xbe   :  { %109 = vst.msk [vmem:[%s219_s4 + $0x8] sm:$0xff] %vm20_vm0, %v107_v2 }

// kernel: trans_layer_forward.3
= control target key start
LH: loop header
LB: loop body
LE: loop exit
PB: predicated region body
PF: predicated region fallthrough
CT: control target
= control target key end

     0   :  { %v154_v0 = vmov 0   ;;  %v155_v5 = vmov 0.0   ;;  %vm156_vm0 = vmmov 0   ;;  %vm85_vm1 = vcmask 130048   ;;  %s224_s1 = inlined_call_operand.vmem [shape: f32[16,1], index: 1, kind: input, shape index: {}]   ;;  %s225_s0 = inlined_call_operand.vmem [shape: f32[16,1], index: 0, kind: input, shape index: {}]   ;;  %s226_s3 = inlined_call_operand.vmem [shape: f32[4,16,128], index: 3, kind: input, shape index: {}]   ;;  %s227_s2 = inlined_call_operand.vmem [shape: bf16[8,16], index: 2, kind: input, shape index: {}]   ;;  %s228_s4 = inlined_call_operand.vmem [shape: f32[8,128], index: 4, kind: output, shape index: {}]  }
   0x1   :  { %153 = vset.pattern.permute.xlu1 %v154_v0  ;;  %152 = vset.pattern.permute.xlu0 %v154_v0  ;;  %v20_v1 = vld [vmem:[%s224_s1] sm:$0xff]  ;;  %v21_v3 = vld [vmem:[%s224_s1 + $0x8] sm:$0xff]  ;;  %v134_v7 = vld [vmem:[%s226_s3 + $0x10] sm:$0xff] }
   0x2   :  { %v18_v2 = vld [vmem:[%s225_s0] sm:$0xff]  ;;  %38 = vperm.xlu1 %153, %v20_v1   ;;  %v19_v4 = vld [vmem:[%s225_s0 + $0x8] sm:$0xff]  ;;  %143 = vmatprep.subr.bf16.mxu0 %v155_v5  ;;  %v138_v11 = vld [vmem:[%s226_s3 + $0x30] sm:$0xff] }
   0x3   :  { %26 = vperm.xlu0 %152, %v18_v2   ;;  %145 = vmatprep.mubr.msk.bf16.mxu0 %vm156_vm0, %v155_v5  ;;  %v22_v6 = vld [vmem:[%s226_s3] sm:$0xff]  ;;  %v23_v15 = vld [vmem:[%s226_s3 + $0x8] sm:$0xff]  ;;  %v135_v16 = vld [vmem:[%s226_s3 + $0x18] sm:$0xff] }
   0x4   :  { %v136_v8 = vld [vmem:[%s226_s3 + $0x20] sm:$0xff]  ;;  %v137_v19 = vld [vmem:[%s226_s3 + $0x28] sm:$0xff]  ;;  %v139_v20 = vld [vmem:[%s226_s3 + $0x38] sm:$0xff] }
   0x5   :  { %v83_v49 = vld [vmem:[%s227_s2] sm:$0xf] }
   0x6   :  { %43 = vperm.xlu1 %153, %v21_v3  }
   0x7   :  { %31 = vperm.xlu0 %152, %v19_v4  }
  0x81   :  { %v39_v9 = vpop.permute.xlu1 %38 }
  0x82   :  { %v27_v10 = vpop.permute.xlu0 %26 }
  0x83   :  { %v34_v12 = vmul.f32 %v27_v10, %v22_v6  ;;  %v53_v13 = vmul.f32 %v134_v7, %v27_v10  ;;  %v64_v14 = vmul.f32 %v136_v8, %v27_v10  ;;  %v75_v22 = vmul.f32 %v138_v11, %v27_v10 }
  0x85   :  { %v46_v17 = vadd.f32 %v39_v9, %v34_v12  ;;  %v55_v18 = vadd.f32 %v53_v13, %v39_v9  ;;  %v66_v21 = vadd.f32 %v64_v14, %v39_v9  ;;  %v44_v28 = vpop.permute.xlu1 %43  ;;  %v77_v35 = vadd.f32 %v75_v22, %v39_v9 }
  0x86   :  { %v32_v23 = vpop.permute.xlu0 %31 }
  0x87   :  { %v48_v24 = vmax.f32 %v46_v17, 0.0  ;;  %v57_v25 = vmax.f32 %v55_v18, 0.0  ;;  %v35_v26 = vmul.f32 %v32_v23, %v23_v15  ;;  %v54_v27 = vmul.f32 %v135_v16, %v32_v23 }
  0x88   :  { %v65_v29 = vmul.f32 %v137_v19, %v32_v23  ;;  %v76_v30 = vmul.f32 %v139_v20, %v32_v23  ;;  %v68_v39 = vmax.f32 %v66_v21, 0.0  ;;  %v79_v44 = vmax.f32 %v77_v35, 0.0 }
  0x89   :  { %v47_v31 = vadd.f32 %v44_v28, %v35_v26  ;;  %v56_v32 = vadd.f32 %v54_v27, %v44_v28  ;;  %v59_v33 = vadd.f32 %v57_v25, %v48_v24 }
  0x8a   :  { %v67_v34 = vadd.f32 %v65_v29, %v44_v28  ;;  %v78_v38 = vadd.f32 %v76_v30, %v44_v28 }
  0x8b   :  { %v49_v36 = vmax.f32 %v47_v31, 0.0  ;;  %v58_v37 = vmax.f32 %v56_v32, 0.0  ;;  %v70_v42 = vadd.f32 %v68_v39, %v59_v33 }
  0x8c   :  { %v69_v40 = vmax.f32 %v67_v34, 0.0  ;;  %v80_v45 = vmax.f32 %v78_v38, 0.0 }
  0x8d   :  { %v60_v41 = vadd.f32 %v58_v37, %v49_v36  ;;  %v81_v46 = vadd.f32 %v79_v44, %v70_v42 }
  0x8f   :  { %v71_v43 = vadd.f32 %v69_v40, %v60_v41 }
  0x91   :  { %v82_v47 = vadd.f32 %v80_v45, %v71_v43 }
  0x93   :  { %v84_v48 = vpack.c.bf16 %v82_v47, %v81_v46 }
  0x95   :  { %144 = vmatpush3.bf16.msra.mxu0 %v84_v48 }
  0x98   :  { %146 = vmatmul.mubr.msk.bf16.vlgmr.msra.gmra.mrb[0].mxu0 %vm85_vm1, %v83_v49 }
 0x16b   :  { %v123_v50 = vpop.f32.mrb[0].mxu0 }
 0x16c   :  { %129 = vst [vmem:[%s228_s4] sm:$0xff] %v123_v50  ;;  %v147_v51 = vpop.f32.mrb[1].mxu0 }
 0x16d   :  { %v126_v52 = vpop.f32.mrb[2].mxu0 }
 0x16e   :  { %v148_v53 = vpop.f32.mrb[3].mxu0 }

</bundles_post_ra>
